<compile_context>
chip_gen: v7x
topology: tpu7x:2x2x1
jax: 0.10.0
libtpu: 0.0.40
codegen_flags: <defaults>
</compile_context>

<pallas_src>
import functools

import jax
import jax.numpy as jnp
from jax import lax
from jax.experimental import pallas as pl
from jax.experimental.pallas import tpu as pltpu


def _round_up(x, m):
    return ((x + m - 1) // m) * m


# ----------------------------------------------------------------------------
# Fused Pallas kernel: patch-embed matmul -> quant_conv matmul -> VQ argmin
# ----------------------------------------------------------------------------
def _image_tokenize_kernel(patches_ref, enc_w_ref, enc_b_ref, qc_w_ref, qc_b_ref,
                           cb_ref, e_sq_ref, feat_ref, idx_ref, *, n_codes):
    # Patch-embed conv as matmul: bf16 inputs, f32 accumulation on the MXU.
    h = jnp.dot(patches_ref[...], enc_w_ref[...],
                preferred_element_type=jnp.float32) + enc_b_ref[...]        # (tm, D) f32
    feat_ref[...] = h.astype(feat_ref.dtype)

    # 1x1 quant_conv as matmul (tiny, kept f32 so the argmin stays stable).
    z = jnp.dot(h, qc_w_ref[...], preferred_element_type=jnp.float32) + qc_b_ref[...]

    # VQ nearest-codebook search.
    #   argmin_k ||z - e_k||^2 == argmin_k (||e_k||^2 - 2 z.e_k)   (||z||^2 dropped)
    # Distances computed transposed, (Kpad, tm): per-token argmin is a sublane
    # reduction and the result is already a lane-dense (1, tm) row.
    ezt = lax.dot_general(cb_ref[...], z, (((1,), (1,)), ((), ())),
                          preferred_element_type=jnp.float32)               # (Kpad, tm)
    d = e_sq_ref[...] - 2.0 * ezt                                           # (Kpad, tm)

    code = lax.broadcasted_iota(jnp.int32, d.shape, 0)                      # code id per row
    d_min = jnp.min(d, axis=0, keepdims=True)                               # (1, tm)
    idx = jnp.min(jnp.where(d <= d_min, code, d.shape[0]),
                  axis=0, keepdims=True)                                    # (1, tm)
    # Clamp: padded sentinel rows never win (huge ||e||^2); also guards the
    # all-NaN degenerate case where the sentinel index would leak through.
    idx = jnp.minimum(idx, n_codes - 1)
    idx_ref[...] = idx[None].astype(jnp.int32)                              # (1, 1, tm)


def image_tokenize(patches, enc_w_mat, enc_b, qc_w_mat, qc_b, codebook, *, tm=None):
    """Fused encoder + quant_conv + VQ.

    patches:   (M, Kpp) f32   rows of flattened patches (M = B*H'*W')
    enc_w_mat: (Kpp, D) f32   patch-embed conv weight as matmul
    qc_w_mat:  (D, D)   f32   1x1 quant_conv weight as matmul
    codebook:  (Kcb, D) f32
    Returns (encoder_feat (M, D) f32, indices (M,) int32).
    """
    M, Kpp = patches.shape
    D = enc_w_mat.shape[1]
    n_codes = codebook.shape[0]

    # Codebook padded to a lane-dense multiple of 128 rows; codebook norms are
    # loop-invariant, so hoist them here (passed as an extra input).
    k_pad = _round_up(max(n_codes, 128), 128)
    cb = jnp.zeros((k_pad, D), jnp.float32).at[:n_codes].set(codebook.astype(jnp.float32))
    e_sq = jnp.sum(cb * cb, axis=-1, keepdims=True)                         # (Kpad, 1)
    e_sq = e_sq.at[n_codes:].set(jnp.float32(1e30))                         # sentinel rows

    # Token-tile size: multiple of 128 (lane-dense idx output), capped at 1024
    # (bf16 patch tile 1024x256 = 512 KiB; double-buffered well under every
    # generation's scoped-VMEM default).
    if tm is None:
        tm = min(1024, _round_up(M, 128))
    m_pad = _round_up(M, tm)
    n_tiles = m_pad // tm

    # bf16 patch slab: halves the dominant input DMA; accumulation stays f32.
    patches_p = jnp.zeros((m_pad, Kpp), jnp.bfloat16).at[:M].set(
        patches.astype(jnp.bfloat16))

    kernel = functools.partial(_image_tokenize_kernel, n_codes=n_codes)
    feat, idx = pl.pallas_call(
        kernel,
        out_shape=(
            jax.ShapeDtypeStruct((m_pad, D), jnp.float32),        # encoder_feat rows
            jax.ShapeDtypeStruct((n_tiles, 1, tm), jnp.int32),    # lane-dense indices
        ),
        grid=(n_tiles,),
        in_specs=[
            pl.BlockSpec((tm, Kpp), lambda i: (i, 0)),            # patches (tiled)
            pl.BlockSpec((Kpp, D), lambda i: (0, 0)),             # enc weight (resident)
            pl.BlockSpec((1, D), lambda i: (0, 0)),               # enc bias
            pl.BlockSpec((D, D), lambda i: (0, 0)),               # quant_conv weight
            pl.BlockSpec((1, D), lambda i: (0, 0)),               # quant_conv bias
            pl.BlockSpec((k_pad, D), lambda i: (0, 0)),           # codebook
            pl.BlockSpec((k_pad, 1), lambda i: (0, 0)),           # hoisted ||e||^2
        ],
        out_specs=(
            pl.BlockSpec((tm, D), lambda i: (i, 0)),
            pl.BlockSpec((1, 1, tm), lambda i: (i, 0, 0)),
        ),
        compiler_params=pltpu.CompilerParams(
            dimension_semantics=("parallel",),
            vmem_limit_bytes=32 * 1024 * 1024,
        ),
    )(
        patches_p,
        enc_w_mat.astype(jnp.bfloat16),
        enc_b.reshape(1, D).astype(jnp.float32),
        qc_w_mat.astype(jnp.float32),
        qc_b.reshape(1, D).astype(jnp.float32),
        cb,
        e_sq,
    )

    idx_flat = idx.reshape(m_pad)[:M]
    return feat[:M], idx_flat


# ----------------------------------------------------------------------------
# ImageTokenizer (JAX/Pallas)
# ----------------------------------------------------------------------------
class ImageTokenizerPallas:
    def __init__(self, key, *, in_channels=4, embed_dim=32, codebook_size=64,
                 downsample_ratio=8, token_offset=1000):
        self.in_channels = in_channels
        self.embed_dim = embed_dim
        self.codebook_size = codebook_size
        self.num_codebook = 1
        self.downsample_ratio = downsample_ratio
        self.offset = token_offset
        self.vocab_size = codebook_size + 2
        # boi/eoi ids exactly as in the reference: offset + len(self) - 2 / - 1
        self.boi_token_id = token_offset + self.vocab_size - 2
        self.eoi_token_id = token_offset + self.vocab_size - 1

        p = downsample_ratio
        k1, k2, k3, k4, k5 = jax.random.split(key, 5)
        # Encoder: patch-embed conv (stride=kernel=p), torch weight layout (out, in, kh, kw)
        self.enc_w = 0.02 * jax.random.normal(k1, (embed_dim, in_channels, p, p), jnp.float32)
        self.enc_b = 0.02 * jax.random.normal(k2, (embed_dim,), jnp.float32)
        # quant_conv: 1x1 conv embed_dim -> embed_dim
        self.qc_w = 0.02 * jax.random.normal(k3, (embed_dim, embed_dim, 1, 1), jnp.float32)
        self.qc_b = 0.02 * jax.random.normal(k4, (embed_dim,), jnp.float32)
        # VQ codebook
        self.codebook = jax.random.normal(k5, (codebook_size, embed_dim), jnp.float32)

    def __len__(self):
        return self.codebook_size + 2

    def _model_encode(self, x):
        """VQModel.encode equivalent: (z_shape_hw, indices (B,H',W'), encoder_feat (B,H'W',C))."""
        B, C, H, W = x.shape
        p = self.downsample_ratio
        assert H % p == 0 and W % p == 0
        Hp, Wp = H // p, W // p

        # Patchify NCHW -> (B*Hp*Wp, C*p*p) rows (same flatten order as torch conv weight).
        # Layout-only glue; could be folded into the kernel's DMA later.
        patches = (x.reshape(B, C, Hp, p, Wp, p)
                    .transpose(0, 2, 4, 1, 3, 5)
                    .reshape(B * Hp * Wp, C * p * p))

        enc_w_mat = self.enc_w.reshape(self.embed_dim, C * p * p).T
        qc_w_mat = self.qc_w.reshape(self.embed_dim, self.embed_dim).T

        feat, idx = image_tokenize(patches, enc_w_mat, self.enc_b,
                                   qc_w_mat, self.qc_b, self.codebook)

        indices = idx.reshape(B, Hp, Wp)                              # (B, H', W')
        encoder_feat = feat.reshape(B, Hp * Wp, self.embed_dim)       # flattened+permuted
        return (Hp, Wp), indices, encoder_feat

    def encode(self, x, add_boi_token=True, add_eoi_token=True):
        (Hp, Wp), indices, encoder_feat = self._model_encode(x)

        # indices: (B,H',W') -> (B,H',W',1) -> permute(3,0,1,2) -> (1,B,H',W')
        indices = indices[..., None]
        indices = jnp.transpose(indices, (3, 0, 1, 2))
        indices = indices + self.offset
        indices = indices.reshape(indices.shape[0], indices.shape[1], -1)  # flatten(2,3)

        Q, B = indices.shape[0], indices.shape[1]
        boi = jnp.full((Q, B, 1 if add_boi_token else 0), self.boi_token_id,
                       dtype=indices.dtype)
        eoi = jnp.full((Q, B, 1 if add_eoi_token else 0), self.eoi_token_id,
                       dtype=indices.dtype)
        input_ids = jnp.concatenate([boi, indices, eoi], axis=-1)

        attention_mask = jnp.ones(input_ids[0].shape, dtype=jnp.int32)
        return {
            "input_ids": input_ids,                 # (Q, B, H'*W' + boi + eoi)
            "image_size": [Hp, Wp],
            "attention_mask": attention_mask,       # (B, H'*W' + boi + eoi)
            "encoder_feat": encoder_feat,           # (B, H'*W', embed_dim)
        }

    def __call__(self, x, **kw):
        return self.encode(x, **kw)


if __name__ == "__main__":
    key = jax.random.PRNGKey(0)
    k_params, k_x = jax.random.split(key)

    B, C, H, W = 2, 4, 16, 16          # downsample_ratio=8 -> 2x2 = 4 image tokens
    tokenizer = ImageTokenizerPallas(
        k_params, in_channels=C, embed_dim=32, codebook_size=64,
        downsample_ratio=8, token_offset=1000,
    )
    x = jax.random.normal(k_x, (B, C, H, W), jnp.float32)

    out = tokenizer(x)
    jax.block_until_ready(
        (out["input_ids"], out["attention_mask"], out["encoder_feat"])
    )

    # ---- structural sanity checks (mirror the torch module's output shapes) ----
    Hp = Wp = H // tokenizer.downsample_ratio
    N = Hp * Wp
    assert out["input_ids"].shape == (1, B, N + 2)
    assert out["attention_mask"].shape == (B, N + 2)
    assert out["encoder_feat"].shape == (B, N, tokenizer.embed_dim)
    assert out["image_size"] == [Hp, Wp]
    assert int(out["input_ids"][0, 0, 0]) == tokenizer.boi_token_id
    assert int(out["input_ids"][0, 0, -1]) == tokenizer.eoi_token_id

    # ---- numeric check against a plain-JAX reference ----
    p = tokenizer.downsample_ratio
    patches = (x.reshape(B, C, Hp, p, Wp, p).transpose(0, 2, 4, 1, 3, 5)
                .reshape(B * Hp * Wp, C * p * p))
    enc_w_mat = tokenizer.enc_w.reshape(tokenizer.embed_dim, -1).T
    qc_w_mat = tokenizer.qc_w.reshape(tokenizer.embed_dim, tokenizer.embed_dim).T
    h_ref = patches @ enc_w_mat + tokenizer.enc_b
    z_ref = h_ref @ qc_w_mat + tokenizer.qc_b
    d_ref = (jnp.sum(z_ref * z_ref, -1, keepdims=True)
             - 2.0 * z_ref @ tokenizer.codebook.T
             + jnp.sum(tokenizer.codebook * tokenizer.codebook, -1)[None])

    feat_k = out["encoder_feat"].reshape(-1, tokenizer.embed_dim)
    assert float(jnp.max(jnp.abs(feat_k - h_ref))) < 5e-2      # bf16 patch-matmul tolerance

    idx_k = out["input_ids"][0, :, 1:-1].reshape(-1) - tokenizer.offset
    assert bool(jnp.all((idx_k >= 0) & (idx_k < tokenizer.codebook_size)))
    # chosen code must be (near-)optimal under the f32 reference distances
    d_pick = jnp.take_along_axis(d_ref, idx_k[:, None], axis=-1)[:, 0]
    assert bool(jnp.all(d_pick <= jnp.min(d_ref, axis=-1) + 5e-2))

    print("KERNEL_OK")
</pallas_src>

<mosaic_0001>
module attributes {stable_mosaic.version = 11 : i64} {
  func.func @_image_tokenize_kernel(%arg0: i32, %arg1: memref<128x256xbf16, #tpu.memory_space<vmem>>, %arg2: memref<256x32xbf16, #tpu.memory_space<vmem>>, %arg3: memref<1x32xf32, #tpu.memory_space<vmem>>, %arg4: memref<32x32xf32, #tpu.memory_space<vmem>>, %arg5: memref<1x32xf32, #tpu.memory_space<vmem>>, %arg6: memref<128x32xf32, #tpu.memory_space<vmem>>, %arg7: memref<128x1xf32, #tpu.memory_space<vmem>>, %arg8: memref<128x32xf32, #tpu.memory_space<vmem>>, %arg9: memref<1x1x128xi32, #tpu.memory_space<vmem>>) attributes {dimension_semantics = [#tpu.dimension_semantics<parallel>], iteration_bounds = array<i64: 1>, scalar_prefetch = 0 : i64, scratch_operands = 0 : i64, tpu.core_type = #tpu.core_type<tc>, window_params = [{transform_indices = @transform_0, window_bounds = array<i64: 128, 256>}, {pipeline_mode = #tpu.pipeline_mode<synchronous>, transform_indices = @transform_1, window_bounds = array<i64: 256, 32>}, {pipeline_mode = #tpu.pipeline_mode<synchronous>, transform_indices = @transform_2, window_bounds = array<i64: 1, 32>}, {pipeline_mode = #tpu.pipeline_mode<synchronous>, transform_indices = @transform_3, window_bounds = array<i64: 32, 32>}, {pipeline_mode = #tpu.pipeline_mode<synchronous>, transform_indices = @transform_4, window_bounds = array<i64: 1, 32>}, {pipeline_mode = #tpu.pipeline_mode<synchronous>, transform_indices = @transform_5, window_bounds = array<i64: 128, 32>}, {pipeline_mode = #tpu.pipeline_mode<synchronous>, transform_indices = @transform_6, window_bounds = array<i64: 128, 1>}, {transform_indices = @transform_7, window_bounds = array<i64: 128, 32>}, {transform_indices = @transform_8, window_bounds = array<i64: 1, 1, 128>}]} {
    %c0 = arith.constant 0 : index
    %c0_0 = arith.constant 0 : index
    %0 = vector.load %arg1[%c0, %c0_0] : memref<128x256xbf16, #tpu.memory_space<vmem>>, vector<128x256xbf16>
    %c0_1 = arith.constant 0 : index
    %c0_2 = arith.constant 0 : index
    %1 = vector.load %arg2[%c0_1, %c0_2] : memref<256x32xbf16, #tpu.memory_space<vmem>>, vector<256x32xbf16>
    %cst = arith.constant dense<0.000000e+00> : vector<128x32xf32>
    %2 = tpu.matmul %0, %1, %cst {dimension_numbers = #tpu.dot_dimension_numbers<[1], [0], [0], [1], [0, 0, 1, 1], [], []>} : vector<128x256xbf16>, vector<256x32xbf16>, vector<128x32xf32> -> vector<128x32xf32>
    %c0_3 = arith.constant 0 : index
    %c0_4 = arith.constant 0 : index
    %3 = vector.load %arg3[%c0_3, %c0_4] : memref<1x32xf32, #tpu.memory_space<vmem>>, vector<1x32xf32>
    %4 = vector.broadcast %3 : vector<1x32xf32> to vector<128x32xf32>
    %5 = arith.addf %2, %4 : vector<128x32xf32>
    %c0_5 = arith.constant 0 : index
    %c0_6 = arith.constant 0 : index
    %6 = vector.load %arg8[%c0_5, %c0_6] : memref<128x32xf32, #tpu.memory_space<vmem>>, vector<128x32xf32>
    tpu.vector_store %arg8[%c0_5, %c0_6], %5 {strides = array<i32>} : memref<128x32xf32, #tpu.memory_space<vmem>>, vector<128x32xf32>,
    %c0_7 = arith.constant 0 : index
    %c0_8 = arith.constant 0 : index
    %7 = vector.load %arg4[%c0_7, %c0_8] : memref<32x32xf32, #tpu.memory_space<vmem>>, vector<32x32xf32>
    %cst_9 = arith.constant dense<0.000000e+00> : vector<128x32xf32>
    %8 = tpu.matmul %5, %7, %cst_9 {dimension_numbers = #tpu.dot_dimension_numbers<[1], [0], [0], [1], [0, 0, 1, 1], [], []>} : vector<128x32xf32>, vector<32x32xf32>, vector<128x32xf32> -> vector<128x32xf32>
    %c0_10 = arith.constant 0 : index
    %c0_11 = arith.constant 0 : index
    %9 = vector.load %arg5[%c0_10, %c0_11] : memref<1x32xf32, #tpu.memory_space<vmem>>, vector<1x32xf32>
    %10 = vector.broadcast %9 : vector<1x32xf32> to vector<128x32xf32>
    %11 = arith.addf %8, %10 : vector<128x32xf32>
    %c0_12 = arith.constant 0 : index
    %c0_13 = arith.constant 0 : index
    %12 = vector.load %arg6[%c0_12, %c0_13] : memref<128x32xf32, #tpu.memory_space<vmem>>, vector<128x32xf32>
    %cst_14 = arith.constant dense<0.000000e+00> : vector<128x128xf32>
    %13 = tpu.matmul %12, %11, %cst_14 {dimension_numbers = #tpu.dot_dimension_numbers<[1], [1], [0], [0], [0, 0, 1, 0], [], []>} : vector<128x32xf32>, vector<128x32xf32>, vector<128x128xf32> -> vector<128x128xf32>
    %c0_15 = arith.constant 0 : index
    %c0_16 = arith.constant 0 : index
    %14 = vector.load %arg7[%c0_15, %c0_16] : memref<128x1xf32, #tpu.memory_space<vmem>>, vector<128x1xf32>
    %cst_17 = arith.constant 2.000000e+00 : f32
    %15 = vector.broadcast %cst_17 : f32 to vector<128x128xf32>
    %16 = arith.mulf %15, %13 : vector<128x128xf32>
    %17 = vector.broadcast %14 : vector<128x1xf32> to vector<128x128xf32>
    %18 = arith.subf %17, %16 : vector<128x128xf32>
    %19 = tpu.iota {dimensions = array<i32: 0>} : vector<128x128xi32>
    %cst_18 = arith.constant dense<0x7F800000> : vector<128xf32>
    %20 = vector.multi_reduction <minimumf>, %18, %cst_18 [0] : vector<128x128xf32> to vector<128xf32>
    %21 = vector.shape_cast %20 : vector<128xf32> to vector<1x128xf32>
    %22 = vector.broadcast %21 : vector<1x128xf32> to vector<128x128xf32>
    %23 = arith.cmpf ole, %18, %22 : vector<128x128xf32>
    %c128_i32 = arith.constant 128 : i32
    %24 = vector.broadcast %c128_i32 : i32 to vector<128x128xi32>
    %25 = arith.select %23, %19, %24 : vector<128x128xi1>, vector<128x128xi32>
    %cst_19 = arith.constant dense<2147483647> : vector<128xi32>
    %26 = vector.multi_reduction <minsi>, %25, %cst_19 [0] : vector<128x128xi32> to vector<128xi32>
    %27 = vector.shape_cast %26 : vector<128xi32> to vector<1x128xi32>
    %c63_i32 = arith.constant 63 : i32
    %28 = vector.broadcast %c63_i32 : i32 to vector<1x128xi32>
    %29 = arith.minsi %27, %28 : vector<1x128xi32>
    %30 = vector.shape_cast %29 : vector<1x128xi32> to vector<1x1x128xi32>
    %c0_20 = arith.constant 0 : index
    %c0_21 = arith.constant 0 : index
    %c0_22 = arith.constant 0 : index
    %31 = vector.load %arg9[%c0_20, %c0_21, %c0_22] : memref<1x1x128xi32, #tpu.memory_space<vmem>>, vector<1x1x128xi32>
    tpu.vector_store %arg9[%c0_20, %c0_21, %c0_22], %30 {strides = array<i32>} : memref<1x1x128xi32, #tpu.memory_space<vmem>>, vector<1x1x128xi32>,
    return
  }
  func.func @transform_0(%arg0: i32) -> (i32, i32) {
    %c0_i32 = arith.constant 0 : i32
    %c0_i32_0 = arith.constant 0 : i32
    return %arg0, %c0_i32 : i32, i32
  }
  func.func @transform_1(%arg0: i32) -> (i32, i32) {
    %c0_i32 = arith.constant 0 : i32
    %c0_i32_0 = arith.constant 0 : i32
    %c0_i32_1 = arith.constant 0 : i32
    return %c0_i32, %c0_i32_0 : i32, i32
  }
  func.func @transform_2(%arg0: i32) -> (i32, i32) {
    %c0_i32 = arith.constant 0 : i32
    %c0_i32_0 = arith.constant 0 : i32
    %c0_i32_1 = arith.constant 0 : i32
    return %c0_i32, %c0_i32_0 : i32, i32
  }
  func.func @transform_3(%arg0: i32) -> (i32, i32) {
    %c0_i32 = arith.constant 0 : i32
    %c0_i32_0 = arith.constant 0 : i32
    %c0_i32_1 = arith.constant 0 : i32
    return %c0_i32, %c0_i32_0 : i32, i32
  }
  func.func @transform_4(%arg0: i32) -> (i32, i32) {
    %c0_i32 = arith.constant 0 : i32
    %c0_i32_0 = arith.constant 0 : i32
    %c0_i32_1 = arith.constant 0 : i32
    return %c0_i32, %c0_i32_0 : i32, i32
  }
  func.func @transform_5(%arg0: i32) -> (i32, i32) {
    %c0_i32 = arith.constant 0 : i32
    %c0_i32_0 = arith.constant 0 : i32
    %c0_i32_1 = arith.constant 0 : i32
    return %c0_i32, %c0_i32_0 : i32, i32
  }
  func.func @transform_6(%arg0: i32) -> (i32, i32) {
    %c0_i32 = arith.constant 0 : i32
    %c0_i32_0 = arith.constant 0 : i32
    %c0_i32_1 = arith.constant 0 : i32
    return %c0_i32, %c0_i32_0 : i32, i32
  }
  func.func @transform_7(%arg0: i32) -> (i32, i32) {
    %c0_i32 = arith.constant 0 : i32
    %c0_i32_0 = arith.constant 0 : i32
    return %arg0, %c0_i32 : i32, i32
  }
  func.func @transform_8(%arg0: i32) -> (i32, i32, i32) {
    %c0_i32 = arith.constant 0 : i32
    %c0_i32_0 = arith.constant 0 : i32
    %c0_i32_1 = arith.constant 0 : i32
    return %arg0, %c0_i32, %c0_i32_0 : i32, i32, i32
  }
}

</mosaic_0001>

<bundles_post_ra>
// kernel: tpu_custom_call.1
= control target key start
LH: loop header
LB: loop body
LE: loop exit
PB: predicated region body
PF: predicated region fallthrough
CT: control target
= control target key end

     0   :  { %s2077_s0 = inlined_call_operand.vmem [shape: bf16[128,256], index: 0, kind: input, shape index: {}]   ;;  %s2078_s1 = inlined_call_operand.vmem [shape: bf16[256,32], index: 1, kind: input, shape index: {}]   ;;  %s2079_s2 = inlined_call_operand.vmem [shape: f32[1,32], index: 2, kind: input, shape index: {}]   ;;  %s2080_s3 = inlined_call_operand.vmem [shape: f32[32,32], index: 3, kind: input, shape index: {}]   ;;  %s2081_s4 = inlined_call_operand.vmem [shape: f32[1,32], index: 4, kind: input, shape index: {}]   ;;  %s2082_s5 = inlined_call_operand.vmem [shape: f32[128,32], index: 5, kind: input, shape index: {}]   ;;  %s2083_s6 = inlined_call_operand.vmem [shape: f32[128,1], index: 6, kind: input, shape index: {}]   ;;  %s2084_s7 = inlined_call_operand.vmem [shape: f32[128,32], index: 7, kind: output, shape index: {0}]   ;;  %s2085_s8 = inlined_call_operand.hbm [shape: s32[1,1,128], index: 8, kind: output, shape index: {1}]  }
   0x1   :  { %v1456_v0 = vld [vmem:[%s2078_s1 + $0x40] sm:$0xff]   ;;  %v1458_v2 = vld [vmem:[%s2078_s1 + $0x48] sm:$0xff]   ;;  %v1460_v4 = vld [vmem:[%s2078_s1 + $0x50] sm:$0xff]  }
   0x2   :  { %v1457_v1 = vld [vmem:[%s2078_s1] sm:$0xff]   ;;  %1176 = vmatprep.subr.bf16.mxu0 %v1456_v0  ;;  %v1459_v3 = vld [vmem:[%s2078_s1 + $0x8] sm:$0xff]   ;;  %v1461_v5 = vld [vmem:[%s2078_s1 + $0x10] sm:$0xff]  }
   0x3   :  { %1177 = vmatpush3.bf16.msra.mxu0 %v1457_v1  ;;  %v1462_v6 = vld [vmem:[%s2078_s1 + $0x58] sm:$0xff]   ;;  %v1464_v8 = vld [vmem:[%s2078_s1 + $0x60] sm:$0xff]   ;;  %v1466_v10 = vld [vmem:[%s2078_s1 + $0x68] sm:$0xff]  }
   0x4   :  { %1178 = vmatprep.subr.bf16.mxu0 %v1458_v2  ;;  %v1463_v7 = vld [vmem:[%s2078_s1 + $0x18] sm:$0xff]   ;;  %v1465_v9 = vld [vmem:[%s2078_s1 + $0x20] sm:$0xff]   ;;  %v1467_v12 = vld [vmem:[%s2078_s1 + $0x28] sm:$0xff]  }
   0x5   :  { %v1474_v11 = vld [vmem:[%s2077_s0 + $0x4] ss:$8 sps:$4 sm:$0xff]   ;;  %v1468_v13 = vld [vmem:[%s2078_s1 + $0x70] sm:$0xff]   ;;  %v1470_v15 = vld [vmem:[%s2078_s1 + $0x78] sm:$0xff]  }
   0x6   :  { %293 = vmatprep.mubr.bf16.mxu0 %v1474_v11  ;;  %v1469_v14 = vld [vmem:[%s2078_s1 + $0x30] sm:$0xff]  }
   0x7   :  { %1179 = vmatpush3.bf16.msra.mxu0 %v1459_v3 }
   0x8   :  { %1180 = vmatprep.subr.bf16.mxu0 %v1460_v4 }
   0xb   :  { %1181 = vmatpush3.bf16.msra.mxu0 %v1461_v5 }
   0xc   :  { %1182 = vmatprep.subr.bf16.mxu0 %v1462_v6 }
   0xf   :  { %1183 = vmatpush3.bf16.msra.mxu0 %v1463_v7 }
  0x10   :  { %1184 = vmatprep.subr.bf16.mxu0 %v1464_v8 }
  0x13   :  { %1185 = vmatpush3.bf16.msra.mxu0 %v1465_v9 }
  0x14   :  { %1186 = vmatprep.subr.bf16.mxu0 %v1466_v10 }
  0x17   :  { %1187 = vmatpush3.bf16.msra.mxu0 %v1467_v12 }
  0x18   :  { %1188 = vmatprep.subr.bf16.mxu0 %v1468_v13 }
  0x19   :  { %14 = vsyncpa [#allocation3], 0  ;;  %v1471_v16 = vld [vmem:[%s2078_s1 + $0x38] sm:$0xff]   ;;  %v1472_v17 = vld [vmem:[%s2077_s0] ss:$8 sps:$4 sm:$0xff]   ;;  %vm358_vm0 = vcmask 261120  }
  0x1a   :  { %v1475_v18 = vld [vmem:[%s2077_s0 + $0x14] ss:$8 sps:$4 sm:$0xff]   ;;  %v1477_v19 = vld [vmem:[%s2077_s0 + $0x10] ss:$8 sps:$4 sm:$0xff]   ;;  %v1478_v20 = vld [vmem:[%s2077_s0 + $0x24] ss:$8 sps:$4 sm:$0xff]  }
  0x1b   :  { %1189 = vmatpush3.bf16.msra.mxu0 %v1469_v14  ;;  %v1480_v21 = vld [vmem:[%s2077_s0 + $0x20] ss:$8 sps:$4 sm:$0xff]   ;;  %v1481_v22 = vld [vmem:[%s2077_s0 + $0x34] ss:$8 sps:$4 sm:$0xff]   ;;  %v1483_v23 = vld [vmem:[%s2077_s0 + $0x30] ss:$8 sps:$4 sm:$0xff]  }
  0x1c   :  { %1190 = vmatprep.subr.bf16.mxu0 %v1470_v15  ;;  %v1484_v24 = vld [vmem:[%s2077_s0 + $0x44] ss:$8 sps:$4 sm:$0xff]   ;;  %v1486_v25 = vld [vmem:[%s2077_s0 + $0x40] ss:$8 sps:$4 sm:$0xff]   ;;  %v1487_v26 = vld [vmem:[%s2077_s0 + $0x54] ss:$8 sps:$4 sm:$0xff]  }
  0x1d   :  { %v1489_v27 = vld [vmem:[%s2077_s0 + $0x50] ss:$8 sps:$4 sm:$0xff]   ;;  %v1490_v28 = vld [vmem:[%s2077_s0 + $0x64] ss:$8 sps:$4 sm:$0xff]   ;;  %v1492_v29 = vld [vmem:[%s2077_s0 + $0x60] ss:$8 sps:$4 sm:$0xff]  }
  0x1e   :  { %v1493_v30 = vld [vmem:[%s2077_s0 + $0x74] ss:$8 sps:$4 sm:$0xff]   ;;  %v1495_v31 = vld [vmem:[%s2077_s0 + $0x70] ss:$8 sps:$4 sm:$0xff]   ;;  %v375_v32 = vld [vmem:[%s2080_s3] sm:$0xff] }
  0x1f   :  { %1191 = vmatpush3.bf16.msra.mxu0 %v1471_v16  ;;  %v376_v33 = vld [vmem:[%s2080_s3 + $0x8] sm:$0xff]  ;;  %v377_v35 = vld [vmem:[%s2080_s3 + $0x10] sm:$0xff]  ;;  %v378_v36 = vld [vmem:[%s2080_s3 + $0x18] sm:$0xff] }
  0x20   :  { %v1380_v34 = vpack.c.bf16 %v376_v33, %v375_v32  ;;  %v1384_v37 = vpack.c.bf16 %v378_v36, %v377_v35  ;;  %v1678_v40 = vld [vmem:[%s2079_s2] ss:$0 sm:$0xff]  ;;  %vm1841_vm1 = vmpackc.low %vm358_vm0, %vm358_vm0 }
  0x22   :  { %294 = vmatmul.mubr.bf16.vlgmr.msra.gmra.mrb[0].mxu0 %v1472_v17  ;;  %1381 = vmatprep.subr.bf16.mxu1 %v1380_v34 }
  0x23   :  { %301 = vmatprep.mubr.bf16.mxu0 %v1475_v18  ;;  %1383 = vmatpush3.bf16.msra.mxu1 %v1380_v34 }
  0x24   :  { %1385 = vmatprep.subr.bf16.mxu1 %v1384_v37 }
  0x27   :  { %1387 = vmatpush3.bf16.msra.mxu1 %v1384_v37 }
  0x2a   :  { %302 = vmatmul.mubr.bf16.gmra.mrb[4].mxu0 %v1477_v19 }
  0x2b   :  { %309 = vmatprep.mubr.bf16.mxu0 %v1478_v20 }
  0x32   :  { %310 = vmatmul.mubr.bf16.gmra.mrb[8].mxu0 %v1480_v21 }
  0x33   :  { %317 = vmatprep.mubr.bf16.mxu0 %v1481_v22 }
  0x3a   :  { %318 = vmatmul.mubr.bf16.gmra.mrb[12].mxu0 %v1483_v23 }
  0x3b   :  { %325 = vmatprep.mubr.bf16.mxu0 %v1484_v24 }
  0x42   :  { %326 = vmatmul.mubr.bf16.gmra.mrb[16].mxu0 %v1486_v25 }
  0x43   :  { %333 = vmatprep.mubr.bf16.mxu0 %v1487_v26 }
  0x4a   :  { %334 = vmatmul.mubr.bf16.gmra.mrb[20].mxu0 %v1489_v27 }
  0x4b   :  { %341 = vmatprep.mubr.bf16.mxu0 %v1490_v28 }
  0x52   :  { %342 = vmatmul.mubr.bf16.gmra.mrb[24].mxu0 %v1492_v29 }
  0x53   :  { %349 = vmatprep.mubr.bf16.mxu0 %v1493_v30 }
  0x5a   :  { %350 = vmatmul.mubr.bf16.gmra.mrb[28].mxu0 %v1495_v31 }
  0xf5   :  { %v1192_v38 = vpop.f32.mrb[0].mxu0 }
  0xf6   :  { %v1193_v39 = vpop.f32.mrb[1].mxu0 }
  0xf7   :  { %v1194_v41 = vadd.f32 %v1193_v39, %v1192_v38  ;;  %v1195_v42 = vpop.f32.mrb[2].mxu0  ;;  %v579_v39 = vld [vmem:[%s2082_s5] sm:$0xff] }
  0xf8   :  { %v1196_v43 = vpop.f32.mrb[3].mxu0  ;;  %1356 = vmatprep.mubr.msk.f32.mxu0 %vm358_vm0, %v579_v39  ;;  %v584_v39 = vld [vmem:[%s2082_s5 + $0x28] sm:$0xff] }
  0xf9   :  { %v1197_v44 = vadd.f32 %v1196_v43, %v1195_v42  ;;  %v296_v45 = vadd.f32 %v1194_v41, %v1678_v40  ;;  %v581_v41 = vld [vmem:[%s2082_s5 + $0x10] sm:$0xff]  ;;  %v836_v42 = vld [vmem:[%s2083_s6] sm:$0xff]  ;;  %v1520_v43 = vmov 0  }
  0xfa   :  { %1455 = vset.pattern.permute.xlu1 %v1520_v43  ;;  %1454 = vset.pattern.permute.xlu0 %v1520_v43  ;;  %v588_v43 = vld [vmem:[%s2082_s5 + $0x48] sm:$0xff] }
  0xfb   :  { %v299_v46 = vadd.f32 %v1197_v44, %v1678_v40  ;;  %359 = vst.msk [vmem:[%s2084_s7] sm:$0xff] %vm358_vm0, %v296_v45  ;;  %1300 = vmatprep.mubr.msk.f32.mxu1 %vm358_vm0, %v296_v45  ;;  %870 = vperm.xlu0 %1454, %v836_v42   ;;  %v839_v44 = vld [vmem:[%s2083_s6 + $0x18] sm:$0xff]  ;;  %v837_v45 = vld [vmem:[%s2083_s6 + $0x8] sm:$0xff]  ;;  %v587_v42 = vld [vmem:[%s2082_s5 + $0x40] sm:$0xff] }
  0xfd   :  { %360 = vst.msk [vmem:[%s2084_s7 + $0x8] sm:$0xff] %vm358_vm0, %v299_v46  ;;  %v1198_v47 = vpop.f32.mrb[4].mxu0  ;;  %1301 = vmatmul.mubr.msk.f32.vlgmr.msra.gmra.mrb[0].mxu1 %vm358_vm0, %v299_v46  ;;  %v841_v46 = vld [vmem:[%s2083_s6 + $0x28] sm:$0xff] }
  0xfe   :  { %v1199_v48 = vpop.f32.mrb[5].mxu0 }
  0xff   :  { %v1200_v49 = vadd.f32 %v1199_v48, %v1198_v47  ;;  %v1201_v50 = vpop.f32.mrb[6].mxu0  ;;  %875 = vperm.xlu0 %1454, %v837_v45   ;;  %v840_v47 = vld [vmem:[%s2083_s6 + $0x20] sm:$0xff]  ;;  %v843_v48 = vld [vmem:[%s2083_s6 + $0x38] sm:$0xff] }
 0x100   :  { %v1202_v51 = vpop.f32.mrb[7].mxu0  ;;  %v590_v45 = vld [vmem:[%s2082_s5 + $0x58] sm:$0xff] }
 0x101   :  { %v304_v52 = vadd.f32 %v1200_v49, %v1678_v40  ;;  %v1203_v53 = vadd.f32 %v1202_v51, %v1201_v50  ;;  %v842_v49 = vld [vmem:[%s2083_s6 + $0x30] sm:$0xff]  ;;  %v845_v50 = vld [vmem:[%s2083_s6 + $0x48] sm:$0xff]  ;;  %v844_v51 = vld [vmem:[%s2083_s6 + $0x40] sm:$0xff] }
 0x103   :  { %361 = vst.msk [vmem:[%s2084_s7 + $0x10] sm:$0xff] %vm358_vm0, %v304_v52  ;;  %v307_v54 = vadd.f32 %v1203_v53, %v1678_v40  ;;  %1303 = vmatprep.mubr.msk.f32.mxu1 %vm358_vm0, %v304_v52  ;;  %890 = vperm.xlu0 %1454, %v840_v47   ;;  %v847_v52 = vld [vmem:[%s2083_s6 + $0x58] sm:$0xff]  ;;  %v846_v53 = vld [vmem:[%s2083_s6 + $0x50] sm:$0xff]  ;;  %v592_v47 = vld [vmem:[%s2082_s5 + $0x68] sm:$0xff] }
 0x105   :  { %362 = vst.msk [vmem:[%s2084_s7 + $0x18] sm:$0xff] %vm358_vm0, %v307_v54  ;;  %v1204_v55 = vpop.f32.mrb[8].mxu0  ;;  %1304 = vmatmul.mubr.msk.f32.gmra.mrb[2].mxu1 %vm358_vm0, %v307_v54  ;;  %v849_v54 = vld [vmem:[%s2083_s6 + $0x68] sm:$0xff] }
 0x106   :  { %v1205_v56 = vpop.f32.mrb[9].mxu0 }
 0x107   :  { %v1206_v57 = vadd.f32 %v1205_v56, %v1204_v55  ;;  %v1207_v58 = vpop.f32.mrb[10].mxu0  ;;  %900 = vperm.xlu0 %1454, %v842_v49   ;;  %v848_v55 = vld [vmem:[%s2083_s6 + $0x60] sm:$0xff]  ;;  %v851_v56 = vld [vmem:[%s2083_s6 + $0x78] sm:$0xff] }
 0x108   :  { %v1208_v59 = vpop.f32.mrb[11].mxu0  ;;  %v594_v49 = vld [vmem:[%s2082_s5 + $0x78] sm:$0xff] }
 0x109   :  { %v312_v60 = vadd.f32 %v1206_v57, %v1678_v40  ;;  %v1209_v61 = vadd.f32 %v1208_v59, %v1207_v58  ;;  %v850_v57 = vld [vmem:[%s2083_s6 + $0x70] sm:$0xff]  ;;  %v1835_v58 = vld [vmem:[%s2081_s4] ss:$0 sm:$0xff] }
 0x10b   :  { %363 = vst.msk [vmem:[%s2084_s7 + $0x20] sm:$0xff] %vm358_vm0, %v312_v60  ;;  %v315_v62 = vadd.f32 %v1209_v61, %v1678_v40  ;;  %1306 = vmatprep.mubr.msk.f32.mxu1 %vm358_vm0, %v312_v60  ;;  %910 = vperm.xlu0 %1454, %v844_v51  }
 0x10d   :  { %364 = vst.msk [vmem:[%s2084_s7 + $0x28] sm:$0xff] %vm358_vm0, %v315_v62  ;;  %v1210_v63 = vpop.f32.mrb[12].mxu0  ;;  %1307 = vmatmul.mubr.msk.f32.gmra.mrb[4].mxu1 %vm358_vm0, %v315_v62 }
 0x10e   :  { %v1211_v0 = vpop.f32.mrb[13].mxu0 }
 0x10f   :  { %v1212_v1 = vadd.f32 %v1211_v0, %v1210_v63  ;;  %v1213_v2 = vpop.f32.mrb[14].mxu0  ;;  %920 = vperm.xlu0 %1454, %v846_v53  }
 0x110   :  { %v1214_v3 = vpop.f32.mrb[15].mxu0 }
 0x111   :  { %v320_v4 = vadd.f32 %v1212_v1, %v1678_v40  ;;  %v1215_v5 = vadd.f32 %v1214_v3, %v1213_v2 }
 0x113   :  { %365 = vst.msk [vmem:[%s2084_s7 + $0x30] sm:$0xff] %vm358_vm0, %v320_v4  ;;  %v323_v6 = vadd.f32 %v1215_v5, %v1678_v40  ;;  %1309 = vmatprep.mubr.msk.f32.mxu1 %vm358_vm0, %v320_v4  ;;  %930 = vperm.xlu0 %1454, %v848_v55  }
 0x115   :  { %366 = vst.msk [vmem:[%s2084_s7 + $0x38] sm:$0xff] %vm358_vm0, %v323_v6  ;;  %v1216_v7 = vpop.f32.mrb[16].mxu0  ;;  %1310 = vmatmul.mubr.msk.f32.gmra.mrb[6].mxu1 %vm358_vm0, %v323_v6 }
 0x116   :  { %v1217_v8 = vpop.f32.mrb[17].mxu0 }
 0x117   :  { %v1218_v9 = vadd.f32 %v1217_v8, %v1216_v7  ;;  %v1219_v10 = vpop.f32.mrb[18].mxu0  ;;  %940 = vperm.xlu0 %1454, %v850_v57  }
 0x118   :  { %v1220_v11 = vpop.f32.mrb[19].mxu0 }
 0x119   :  { %v328_v12 = vadd.f32 %v1218_v9, %v1678_v40  ;;  %v1221_v13 = vadd.f32 %v1220_v11, %v1219_v10 }
 0x11b   :  { %367 = vst.msk [vmem:[%s2084_s7 + $0x40] sm:$0xff] %vm358_vm0, %v328_v12  ;;  %v331_v14 = vadd.f32 %v1221_v13, %v1678_v40  ;;  %1312 = vmatprep.mubr.msk.f32.mxu1 %vm358_vm0, %v328_v12 }
 0x11d   :  { %368 = vst.msk [vmem:[%s2084_s7 + $0x48] sm:$0xff] %vm358_vm0, %v331_v14  ;;  %v1222_v15 = vpop.f32.mrb[20].mxu0  ;;  %1313 = vmatmul.mubr.msk.f32.gmra.mrb[8].mxu1 %vm358_vm0, %v331_v14 }
 0x11e   :  { %v1223_v16 = vpop.f32.mrb[21].mxu0 }
 0x11f   :  { %v1224_v17 = vadd.f32 %v1223_v16, %v1222_v15  ;;  %v1225_v18 = vpop.f32.mrb[22].mxu0 }
 0x120   :  { %v1226_v19 = vpop.f32.mrb[23].mxu0 }
 0x121   :  { %v336_v20 = vadd.f32 %v1224_v17, %v1678_v40  ;;  %v1227_v21 = vadd.f32 %v1226_v19, %v1225_v18 }
 0x123   :  { %369 = vst.msk [vmem:[%s2084_s7 + $0x50] sm:$0xff] %vm358_vm0, %v336_v20  ;;  %v339_v22 = vadd.f32 %v1227_v21, %v1678_v40  ;;  %1315 = vmatprep.mubr.msk.f32.mxu1 %vm358_vm0, %v336_v20 }
 0x125   :  { %370 = vst.msk [vmem:[%s2084_s7 + $0x58] sm:$0xff] %vm358_vm0, %v339_v22  ;;  %v1228_v23 = vpop.f32.mrb[24].mxu0  ;;  %1316 = vmatmul.mubr.msk.f32.gmra.mrb[10].mxu1 %vm358_vm0, %v339_v22 }
 0x126   :  { %v1229_v24 = vpop.f32.mrb[25].mxu0 }
 0x127   :  { %v1230_v25 = vadd.f32 %v1229_v24, %v1228_v23  ;;  %v1231_v26 = vpop.f32.mrb[26].mxu0 }
 0x128   :  { %v1232_v27 = vpop.f32.mrb[27].mxu0 }
 0x129   :  { %v344_v28 = vadd.f32 %v1230_v25, %v1678_v40  ;;  %v1233_v29 = vadd.f32 %v1232_v27, %v1231_v26 }
 0x12b   :  { %371 = vst.msk [vmem:[%s2084_s7 + $0x60] sm:$0xff] %vm358_vm0, %v344_v28  ;;  %v347_v30 = vadd.f32 %v1233_v29, %v1678_v40  ;;  %1318 = vmatprep.mubr.msk.f32.mxu1 %vm358_vm0, %v344_v28 }
 0x12d   :  { %372 = vst.msk [vmem:[%s2084_s7 + $0x68] sm:$0xff] %vm358_vm0, %v347_v30  ;;  %v1234_v31 = vpop.f32.mrb[28].mxu0  ;;  %1319 = vmatmul.mubr.msk.f32.gmra.mrb[12].mxu1 %vm358_vm0, %v347_v30 }
 0x12e   :  { %v1235_v32 = vpop.f32.mrb[29].mxu0 }
 0x12f   :  { %v1236_v33 = vadd.f32 %v1235_v32, %v1234_v31  ;;  %v1237_v34 = vpop.f32.mrb[30].mxu0 }
 0x130   :  { %v1238_v35 = vpop.f32.mrb[31].mxu0 }
 0x131   :  { %v352_v36 = vadd.f32 %v1236_v33, %v1678_v40  ;;  %v1239_v37 = vadd.f32 %v1238_v35, %v1237_v34 }
 0x133   :  { %373 = vst.msk [vmem:[%s2084_s7 + $0x70] sm:$0xff] %vm358_vm0, %v352_v36  ;;  %v355_v38 = vadd.f32 %v1239_v37, %v1678_v40  ;;  %1321 = vmatprep.mubr.msk.f32.mxu1 %vm358_vm0, %v352_v36  ;;  %v838_v40 = vld [vmem:[%s2083_s6 + $0x10] sm:$0xff]  ;;  %v580_v36 = vld [vmem:[%s2082_s5 + $0x8] sm:$0xff]  ;;  %v582_v37 = vld [vmem:[%s2082_s5 + $0x18] sm:$0xff] }
 0x134   :  { %880 = vperm.xlu1 %1455, %v838_v40   ;;  %v586_v40 = vld [vmem:[%s2082_s5 + $0x38] sm:$0xff] }
 0x135   :  { %374 = vst.msk [vmem:[%s2084_s7 + $0x78] sm:$0xff] %vm358_vm0, %v355_v38  ;;  %1322 = vmatmul.mubr.msk.f32.gmra.mrb[14].mxu1 %vm358_vm0, %v355_v38  ;;  %v583_v38 = vld [vmem:[%s2082_s5 + $0x20] sm:$0xff] }
 0x136   :  { %1359 = vmatprep.mubr.msk.f32.mxu1 %vm358_vm0, %v581_v41  ;;  %v585_v41 = vld [vmem:[%s2082_s5 + $0x30] sm:$0xff] }
 0x138   :  { %885 = vperm.xlu1 %1455, %v839_v44   ;;  %v589_v44 = vld [vmem:[%s2082_s5 + $0x50] sm:$0xff] }
 0x13c   :  { %895 = vperm.xlu1 %1455, %v841_v46   ;;  %v591_v46 = vld [vmem:[%s2082_s5 + $0x60] sm:$0xff] }
 0x140   :  { %905 = vperm.xlu1 %1455, %v843_v48   ;;  %v593_v48 = vld [vmem:[%s2082_s5 + $0x70] sm:$0xff]  ;;  %s1521_s5 = smov [#allocation2]  }
 0x141   :  { %s1084_s23 = sshll.u32 %s1521_s5, 4  ;;  %s1085_s23 = int_to_ptr.vmem [resolvable:$true] %s1084_s23 }
 0x142   :  { %s1496_s4 = scalar_lea.vmem %s1085_s23, 16  ;;  %s1500_s6 = scalar_lea.vmem %s1085_s23, 32 }
 0x143   :  { %p1497_p0 = scmp.ne.s32.totalorder %s1085_s23, %s1496_s4  ;;  %p1501_p1 = scmp.lt.s32.totalorder %s1085_s23, %s1085_s23 }
 0x144   :  { %915 = vperm.xlu1 %1455, %v845_v50   ;;  %p1502_p2 = scmp.lt.s32.totalorder %s1500_s6, %s1496_s4 }
 0x146   :  { %p1503_p3 = por %p1502_p2, %p1501_p1 }
 0x148   :  { %925 = vperm.xlu1 %1455, %v847_v52   ;;  %p1504_p4 = pnand %p1503_p3, %p1497_p0 }
 0x14c   :  { %935 = vperm.xlu1 %1455, %v849_v54  }
 0x150   :  { %945 = vperm.xlu1 %1455, %v851_v56  }
 0x17a   :  { %v871_v51 = vpop.permute.xlu0 %870 }
 0x17e   :  { %v876_v53 = vpop.permute.xlu0 %875 }
 0x182   :  { %v891_v55 = vpop.permute.xlu0 %890 }
 0x1b3   :  { %v881_v50 = vpop.permute.xlu1 %880 }
 0x1b7   :  { %v886_v52 = vpop.permute.xlu1 %885 }
 0x1bb   :  { %v896_v54 = vpop.permute.xlu1 %895 }
 0x1d0   :  { %v1302_v59 = vpop.f32.mrb[0].mxu1 }
 0x1d1   :  { %v506_v60 = vadd.f32 %v1302_v59, %v1835_v58  ;;  %v500_v61 = vpop.f32.mrb[1].mxu1 }
 0x1d2   :  { %v501_v62 = vadd.f32 %v1835_v58, %v500_v61  ;;  %v901_v61 = vpop.permute.xlu0 %900 }
 0x1d4   :  { %v1388_v0 = vpack.c.bf16 %v506_v60, %v501_v62  ;;  %v906_v60 = vpop.permute.xlu1 %905 }
 0x1d6   :  { %1390 = vmatprep.subr.msk.bf16.mxu0 %vm1841_vm1, %v1388_v0  ;;  %1436 = vmatprep.subr.msk.bf16.mxu1 %vm1841_vm1, %v1388_v0 }
 0x1d7   :  { %1393 = vmatpush3.bf16.xpose.msk.msra.mxu0 %vm1841_vm1, %v1388_v0  ;;  %1444 = vmatpush3.bf16.xpose.msk.msra.mxu1 %vm1841_vm1, %v1388_v0 }
 0x1d8   :  { %v1305_v1 = vpop.f32.mrb[2].mxu1 }
 0x1d9   :  { %v516_v2 = vadd.f32 %v1305_v1, %v1835_v58  ;;  %v510_v3 = vpop.f32.mrb[3].mxu1 }
 0x1da   :  { %v511_v4 = vadd.f32 %v1835_v58, %v510_v3 }
 0x1dc   :  { %v1394_v5 = vpack.c.bf16 %v516_v2, %v511_v4 }
 0x1de   :  { %1396 = vmatprep.subr.msk.bf16.mxu0 %vm1841_vm1, %v1394_v5  ;;  %1437 = vmatprep.subr.msk.bf16.mxu1 %vm1841_vm1, %v1394_v5 }
 0x1df   :  { %1399 = vmatpush3.bf16.xpose.msk.msra.mxu0 %vm1841_vm1, %v1394_v5  ;;  %1445 = vmatpush3.bf16.xpose.msk.msra.mxu1 %vm1841_vm1, %v1394_v5 }
 0x1e0   :  { %v1308_v6 = vpop.f32.mrb[4].mxu1 }
 0x1e1   :  { %v526_v7 = vadd.f32 %v1308_v6, %v1835_v58  ;;  %v520_v8 = vpop.f32.mrb[5].mxu1 }
 0x1e2   :  { %v521_v9 = vadd.f32 %v1835_v58, %v520_v8 }
 0x1e4   :  { %v1400_v10 = vpack.c.bf16 %v526_v7, %v521_v9  ;;  %v916_v7 = vpop.permute.xlu1 %915 }
 0x1e6   :  { %1402 = vmatprep.subr.msk.bf16.mxu0 %vm1841_vm1, %v1400_v10  ;;  %1438 = vmatprep.subr.msk.bf16.mxu1 %vm1841_vm1, %v1400_v10 }
 0x1e7   :  { %1405 = vmatpush3.bf16.xpose.msk.msra.mxu0 %vm1841_vm1, %v1400_v10  ;;  %1446 = vmatpush3.bf16.xpose.msk.msra.mxu1 %vm1841_vm1, %v1400_v10 }
 0x1e8   :  { %v1311_v11 = vpop.f32.mrb[6].mxu1 }
 0x1e9   :  { %v536_v12 = vadd.f32 %v1311_v11, %v1835_v58  ;;  %v530_v13 = vpop.f32.mrb[7].mxu1 }
 0x1ea   :  { %v531_v14 = vadd.f32 %v1835_v58, %v530_v13 }
 0x1ec   :  { %v1406_v15 = vpack.c.bf16 %v536_v12, %v531_v14  ;;  %v911_v12 = vpop.permute.xlu0 %910 }
 0x1ee   :  { %1408 = vmatprep.subr.msk.bf16.mxu0 %vm1841_vm1, %v1406_v15  ;;  %1439 = vmatprep.subr.msk.bf16.mxu1 %vm1841_vm1, %v1406_v15 }
 0x1ef   :  { %1411 = vmatpush3.bf16.xpose.msk.msra.mxu0 %vm1841_vm1, %v1406_v15  ;;  %1447 = vmatpush3.bf16.xpose.msk.msra.mxu1 %vm1841_vm1, %v1406_v15 }
 0x1f0   :  { %v1314_v16 = vpop.f32.mrb[8].mxu1 }
 0x1f1   :  { %v546_v17 = vadd.f32 %v1314_v16, %v1835_v58  ;;  %v540_v18 = vpop.f32.mrb[9].mxu1 }
 0x1f2   :  { %v541_v19 = vadd.f32 %v1835_v58, %v540_v18 }
 0x1f4   :  { %v1412_v20 = vpack.c.bf16 %v546_v17, %v541_v19 }
 0x1f6   :  { %1414 = vmatprep.subr.msk.bf16.mxu0 %vm1841_vm1, %v1412_v20  ;;  %1440 = vmatprep.subr.msk.bf16.mxu1 %vm1841_vm1, %v1412_v20 }
 0x1f7   :  { %1417 = vmatpush3.bf16.xpose.msk.msra.mxu0 %vm1841_vm1, %v1412_v20  ;;  %1448 = vmatpush3.bf16.xpose.msk.msra.mxu1 %vm1841_vm1, %v1412_v20 }
 0x1f8   :  { %v1317_v21 = vpop.f32.mrb[10].mxu1 }
 0x1f9   :  { %v556_v22 = vadd.f32 %v1317_v21, %v1835_v58  ;;  %v550_v23 = vpop.f32.mrb[11].mxu1 }
 0x1fa   :  { %v551_v24 = vadd.f32 %v1835_v58, %v550_v23 }
 0x1fc   :  { %v1418_v25 = vpack.c.bf16 %v556_v22, %v551_v24 }
 0x1fe   :  { %1420 = vmatprep.subr.msk.bf16.mxu0 %vm1841_vm1, %v1418_v25  ;;  %1441 = vmatprep.subr.msk.bf16.mxu1 %vm1841_vm1, %v1418_v25 }
 0x1ff   :  { %1423 = vmatpush3.bf16.xpose.msk.msra.mxu0 %vm1841_vm1, %v1418_v25  ;;  %1449 = vmatpush3.bf16.xpose.msk.msra.mxu1 %vm1841_vm1, %v1418_v25 }
 0x200   :  { %v1320_v26 = vpop.f32.mrb[12].mxu1 }
 0x201   :  { %v566_v27 = vadd.f32 %v1320_v26, %v1835_v58  ;;  %v560_v28 = vpop.f32.mrb[13].mxu1  ;;  %v926_v26 = vpop.permute.xlu1 %925 }
 0x202   :  { %v561_v29 = vadd.f32 %v1835_v58, %v560_v28 }
 0x204   :  { %v1424_v30 = vpack.c.bf16 %v566_v27, %v561_v29  ;;  %v921_v29 = vpop.permute.xlu0 %920 }
 0x206   :  { %1426 = vmatprep.subr.msk.bf16.mxu0 %vm1841_vm1, %v1424_v30  ;;  %1442 = vmatprep.subr.msk.bf16.mxu1 %vm1841_vm1, %v1424_v30 }
 0x207   :  { %1429 = vmatpush3.bf16.xpose.msk.msra.mxu0 %vm1841_vm1, %v1424_v30  ;;  %1450 = vmatpush3.bf16.xpose.msk.msra.mxu1 %vm1841_vm1, %v1424_v30 }
 0x208   :  { %v1323_v31 = vpop.f32.mrb[14].mxu1 }
 0x209   :  { %v576_v32 = vadd.f32 %v1323_v31, %v1835_v58  ;;  %v570_v33 = vpop.f32.mrb[15].mxu1 }
 0x20a   :  { %v571_v34 = vadd.f32 %v1835_v58, %v570_v33 }
 0x20c   :  { %v1430_v35 = vpack.c.bf16 %v576_v32, %v571_v34 }
 0x20e   :  { %1432 = vmatprep.subr.msk.bf16.mxu0 %vm1841_vm1, %v1430_v35  ;;  %1443 = vmatprep.subr.msk.bf16.mxu1 %vm1841_vm1, %v1430_v35 }
 0x20f   :  { %1435 = vmatpush3.bf16.xpose.msk.msra.mxu0 %vm1841_vm1, %v1430_v35  ;;  %1451 = vmatpush3.bf16.xpose.msk.msra.mxu1 %vm1841_vm1, %v1430_v35 }
 0x216   :  { %1357 = vmatmul.mubr.msk.f32.vlgmr.msra.gmra.mrb[32].mxu0 %vm358_vm0, %v580_v36  ;;  %1360 = vmatmul.mubr.msk.f32.vlgmr.msra.gmra.mrb[16].mxu1 %vm358_vm0, %v582_v37 }
 0x217   :  { %1362 = vmatprep.mubr.msk.f32.mxu1 %vm358_vm0, %v583_v38 }
 0x21a   :  { %1363 = vmatmul.mubr.msk.f32.gmra.mrb[18].mxu1 %vm358_vm0, %v584_v39  ;;  %v936_v39 = vpop.permute.xlu1 %935 }
 0x21b   :  { %1365 = vmatprep.mubr.msk.f32.mxu1 %vm358_vm0, %v585_v41 }
 0x21e   :  { %1366 = vmatmul.mubr.msk.f32.gmra.mrb[20].mxu1 %vm358_vm0, %v586_v40 }
 0x21f   :  { %1368 = vmatprep.mubr.msk.f32.mxu1 %vm358_vm0, %v587_v42  ;;  %v931_v42 = vpop.permute.xlu0 %930 }
 0x222   :  { %1369 = vmatmul.mubr.msk.f32.gmra.mrb[22].mxu1 %vm358_vm0, %v588_v43 }
 0x223   :  { %1371 = vmatprep.mubr.msk.f32.mxu1 %vm358_vm0, %v589_v44 }
 0x226   :  { %1372 = vmatmul.mubr.msk.f32.gmra.mrb[24].mxu1 %vm358_vm0, %v590_v45 }
 0x227   :  { %1374 = vmatprep.mubr.msk.f32.mxu1 %vm358_vm0, %v591_v46 }
 0x22a   :  { %1375 = vmatmul.mubr.msk.f32.gmra.mrb[26].mxu1 %vm358_vm0, %v592_v47 }
 0x22b   :  { %1377 = vmatprep.mubr.msk.f32.mxu1 %vm358_vm0, %v593_v48 }
 0x22e   :  { %1378 = vmatmul.mubr.msk.f32.gmra.mrb[28].mxu1 %vm358_vm0, %v594_v49 }
 0x2e9   :  { %v1358_v56 = vpop.f32.mrb[32].mxu0  ;;  %v1361_v57 = vpop.f32.mrb[16].mxu1 }
 0x2ea   :  { %v757_v58 = vpop.f32.mrb[33].mxu0  ;;  %v767_v59 = vpop.f32.mrb[17].mxu1  ;;  %v853_v62 = vmul.f32 2.0, %v1358_v56  ;;  %v855_v5 = vmul.f32 2.0, %v1361_v57 }
 0x2eb   :  { %v852_v63 = vmul.f32 2.0, %v757_v58  ;;  %v854_v9 = vmul.f32 2.0, %v767_v59  ;;  %v941_v57 = vpop.permute.xlu0 %940 }
 0x2ec   :  { %v1979_v4 = vsub.f32 %v876_v53, %v853_v62  ;;  %v1991_v18 = vsub.f32 %v886_v52, %v855_v5 }
 0x2ed   :  { %v1364_v0 = vpop.f32.mrb[18].mxu1  ;;  %v1983_v8 = vsub.f32 %v871_v51, %v852_v63  ;;  %v1995_v20 = vsub.f32 %v881_v50, %v854_v9 }
 0x2ee   :  { %v857_v1 = vmul.f32 2.0, %v1364_v0  ;;  %v777_v2 = vpop.f32.mrb[19].mxu1 }
 0x2ef   :  { %v856_v3 = vmul.f32 2.0, %v777_v2 }
 0x2f0   :  { %v1981_v6 = vsub.f32 %v896_v54, %v857_v1  ;;  %v946_v54 = vpop.permute.xlu1 %945  ;;  %v964_v1 = vlaneseq }
 0x2f1   :  { %v1985_v10 = vsub.f32 %v891_v55, %v856_v3  ;;  %v1367_v11 = vpop.f32.mrb[20].mxu1 }
 0x2f2   :  { %v982_v13 = vmin.f32 %v1979_v4, %v1981_v6  ;;  %v859_v14 = vmul.f32 2.0, %v1367_v11  ;;  %v787_v15 = vpop.f32.mrb[21].mxu1  ;;  %v965_v5 = vshrl.u32 %v964_v1, 7 }
 0x2f3   :  { %v981_v16 = vmin.f32 %v1983_v8, %v1985_v10  ;;  %v858_v17 = vmul.f32 2.0, %v787_v15 }
 0x2f4   :  { %v1993_v19 = vsub.f32 %v906_v60, %v859_v14  ;;  %v966_v11 = vadd.s32 8, %v965_v5  ;;  %v969_v14 = vadd.s32 32, %v965_v5 }
 0x2f5   :  { %v1997_v21 = vsub.f32 %v901_v61, %v858_v17  ;;  %v1370_v22 = vpop.f32.mrb[22].mxu1  ;;  %v971_v17 = vadd.s32 48, %v965_v5 }
 0x2f6   :  { %v984_v23 = vmin.f32 %v1991_v18, %v1993_v19  ;;  %v861_v24 = vmul.f32 2.0, %v1370_v22  ;;  %v797_v25 = vpop.f32.mrb[23].mxu1  ;;  %v972_v22 = vadd.s32 56, %v965_v5 }
 0x2f7   :  { %v983_v27 = vmin.f32 %v1995_v20, %v1997_v21  ;;  %v860_v28 = vmul.f32 2.0, %v797_v25  ;;  %v975_v25 = vadd.s32 80, %v965_v5 }
 0x2f8   :  { %v2003_v30 = vsub.f32 %v916_v7, %v861_v24  ;;  %v974_v24 = vadd.s32 72, %v965_v5 }
 0x2f9   :  { %v2005_v31 = vsub.f32 %v911_v12, %v860_v28  ;;  %v1373_v32 = vpop.f32.mrb[24].mxu1  ;;  %v967_v12 = vadd.s32 16, %v965_v5  ;;  %v977_v28 = vadd.s32 96, %v965_v5 }
 0x2fa   :  { %v986_v33 = vmin.f32 %v982_v13, %v2003_v30  ;;  %v863_v34 = vmul.f32 2.0, %v1373_v32  ;;  %v807_v35 = vpop.f32.mrb[25].mxu1  ;;  %v968_v13 = vadd.s32 24, %v965_v5  ;;  %v979_v32 = vadd.s32 112, %v965_v5 }
 0x2fb   :  { %v985_v36 = vmin.f32 %v981_v16, %v2005_v31  ;;  %v862_v37 = vmul.f32 2.0, %v807_v35  ;;  %v970_v16 = vadd.s32 40, %v965_v5 }
 0x2fc   :  { %v2009_v38 = vsub.f32 %v926_v26, %v863_v34  ;;  %v976_v26 = vadd.s32 88, %v965_v5 }
 0x2fd   :  { %v2011_v41 = vsub.f32 %v921_v29, %v862_v37  ;;  %v1376_v40 = vpop.f32.mrb[26].mxu1  ;;  %v978_v29 = vadd.s32 104, %v965_v5 }
 0x2fe   :  { %v988_v43 = vmin.f32 %v984_v23, %v2009_v38  ;;  %v865_v44 = vmul.f32 2.0, %v1376_v40  ;;  %v817_v45 = vpop.f32.mrb[27].mxu1  ;;  %v973_v23 = vadd.s32 64, %v965_v5 }
 0x2ff   :  { %v987_v46 = vmin.f32 %v983_v27, %v2011_v41  ;;  %v864_v47 = vmul.f32 2.0, %v817_v45 }
 0x300   :  { %v2015_v48 = vsub.f32 %v936_v39, %v865_v44 }
 0x301   :  { %v2017_v49 = vsub.f32 %v931_v42, %v864_v47  ;;  %v1379_v50 = vpop.f32.mrb[28].mxu1 }
 0x302   :  { %v990_v51 = vmin.f32 %v986_v33, %v2015_v48  ;;  %v867_v52 = vmul.f32 2.0, %v1379_v50  ;;  %v827_v53 = vpop.f32.mrb[29].mxu1  ;;  %v980_v33 = vadd.s32 120, %v965_v5 }
 0x303   :  { %v989_v55 = vmin.f32 %v985_v36, %v2017_v49  ;;  %v866_v56 = vmul.f32 2.0, %v827_v53 }
 0x304   :  { %v963_v58 = vsub.f32 %v946_v54, %v867_v52 }
 0x305   :  { %v993_v59 = vmin.f32 %v989_v55, %v990_v51  ;;  %v962_v60 = vsub.f32 %v941_v57, %v866_v56 }
 0x306   :  { %v992_v61 = vmin.f32 %v988_v43, %v963_v58 }
 0x307   :  { %v991_v62 = vmin.f32 %v987_v46, %v962_v60 }
 0x309   :  { %v994_v63 = vmin.f32 %v991_v62, %v992_v61 }
 0x30b   :  { %v995_v0 = vmin.f32 %v993_v59, %v994_v63 }
 0x30d   :  { %v996_v2 = vrot.slane %v995_v0, 4 }
 0x30f   :  { %v997_v3 = vmin.f32 %v995_v0, %v996_v2 }
 0x311   :  { %v998_v7 = vrot.slane %v997_v3, 2 }
 0x313   :  { %v999_v9 = vmin.f32 %v997_v3, %v998_v7 }
 0x315   :  { %v1000_v15 = vrot.slane %v999_v9, 1 }
 0x317   :  { %v1001_v27 = vmin.f32 %v999_v9, %v1000_v15 }
 0x319   :  { %vm1002_vm2 = vcmp.le.f32.partialorder %v1983_v8, %v1001_v27  ;;  %vm1003_vm3 = vcmp.le.f32.partialorder %v1979_v4, %v1001_v27  ;;  %vm1004_vm4 = vcmp.le.f32.partialorder %v1995_v20, %v1001_v27  ;;  %vm1005_vm5 = vcmp.le.f32.partialorder %v1991_v18, %v1001_v27 }
 0x31a   :  { %vm1006_vm6 = vcmp.le.f32.partialorder %v1985_v10, %v1001_v27  ;;  %vm1007_vm7 = vcmp.le.f32.partialorder %v1981_v6, %v1001_v27  ;;  %vm1008_vm8 = vcmp.le.f32.partialorder %v1997_v21, %v1001_v27  ;;  %vm1009_vm9 = vcmp.le.f32.partialorder %v1993_v19, %v1001_v27 }
 0x31b   :  { %vm1010_vm10 = vcmp.le.f32.partialorder %v2005_v31, %v1001_v27  ;;  %vm1011_vm11 = vcmp.le.f32.partialorder %v2003_v30, %v1001_v27  ;;  %vm1012_vm12 = vcmp.le.f32.partialorder %v2011_v41, %v1001_v27  ;;  %vm1013_vm13 = vcmp.le.f32.partialorder %v2009_v38, %v1001_v27 }
 0x31c   :  { %vm1014_vm14 = vcmp.le.f32.partialorder %v2017_v49, %v1001_v27  ;;  %vm1015_vm15 = vcmp.le.f32.partialorder %v2015_v48, %v1001_v27  ;;  %vm1016_vm0 = vcmp.le.f32.partialorder %v962_v60, %v1001_v27  ;;  %vm1017_vm1 = vcmp.le.f32.partialorder %v963_v58, %v1001_v27 }
 0x31d   :  { %v1018_v34 = vsel %vm1002_vm2, %v965_v5, 128  ;;  %v1019_v35 = vsel %vm1003_vm3, %v966_v11, 128  ;;  %v1020_v36 = vsel %vm1004_vm4, %v967_v12, 128  ;;  %v1021_v37 = vsel %vm1005_vm5, %v968_v13, 128 }
 0x31e   :  { %v1022_v39 = vsel %vm1006_vm6, %v969_v14, 128  ;;  %v1023_v40 = vsel %vm1007_vm7, %v970_v16, 128  ;;  %v1024_v42 = vsel %vm1008_vm8, %v971_v17, 128  ;;  %v1025_v8 = vsel %vm1009_vm9, %v972_v22, 128 }
 0x31f   :  { %v1026_v4 = vsel %vm1010_vm10, %v973_v23, 128  ;;  %v1027_v20 = vsel %vm1011_vm11, %v974_v24, 128  ;;  %v1028_v18 = vsel %vm1012_vm12, %v975_v25, 128  ;;  %v1029_v10 = vsel %vm1013_vm13, %v976_v26, 128 }
 0x320   :  { %v1030_v6 = vsel %vm1014_vm14, %v977_v28, 128  ;;  %v1031_v21 = vsel %vm1015_vm15, %v978_v29, 128  ;;  %v1032_v19 = vsel %vm1016_vm0, %v979_v32, 128  ;;  %v1033_v31 = vsel %vm1017_vm1, %v980_v33, 128 }
 0x321   :  { %vm1034_vm2 = vcmp.lt.s32.totalorder %v1018_v34, %v1022_v39  ;;  %vm1036_vm3 = vcmp.lt.s32.totalorder %v1019_v35, %v1023_v40  ;;  %vm1038_vm4 = vcmp.lt.s32.totalorder %v1020_v36, %v1024_v42  ;;  %vm1040_vm5 = vcmp.lt.s32.totalorder %v1021_v37, %v1025_v8 }
 0x322   :  { %v1035_v30 = vsel %vm1034_vm2, %v1018_v34, %v1022_v39  ;;  %v1037_v41 = vsel %vm1036_vm3, %v1019_v35, %v1023_v40  ;;  %v1039_v43 = vsel %vm1038_vm4, %v1020_v36, %v1024_v42  ;;  %v1041_v44 = vsel %vm1040_vm5, %v1021_v37, %v1025_v8 }
 0x323   :  { %vm1042_vm6 = vcmp.lt.s32.totalorder %v1035_v30, %v1026_v4  ;;  %vm1044_vm7 = vcmp.lt.s32.totalorder %v1037_v41, %v1027_v20  ;;  %vm1046_vm8 = vcmp.lt.s32.totalorder %v1039_v43, %v1028_v18  ;;  %vm1048_vm9 = vcmp.lt.s32.totalorder %v1041_v44, %v1029_v10 }
 0x324   :  { %v1043_v38 = vsel %vm1042_vm6, %v1035_v30, %v1026_v4  ;;  %v1045_v45 = vsel %vm1044_vm7, %v1037_v41, %v1027_v20  ;;  %v1047_v46 = vsel %vm1046_vm8, %v1039_v43, %v1028_v18  ;;  %v1049_v47 = vsel %vm1048_vm9, %v1041_v44, %v1029_v10 }
 0x325   :  { %vm1050_vm10 = vcmp.lt.s32.totalorder %v1043_v38, %v1030_v6  ;;  %vm1052_vm11 = vcmp.lt.s32.totalorder %v1045_v45, %v1031_v21  ;;  %vm1054_vm12 = vcmp.lt.s32.totalorder %v1047_v46, %v1032_v19  ;;  %vm1056_vm13 = vcmp.lt.s32.totalorder %v1049_v47, %v1033_v31 }
 0x326   :  { %v1051_v48 = vsel %vm1050_vm10, %v1043_v38, %v1030_v6  ;;  %v1053_v49 = vsel %vm1052_vm11, %v1045_v45, %v1031_v21  ;;  %v1055_v50 = vsel %vm1054_vm12, %v1047_v46, %v1032_v19  ;;  %v1057_v51 = vsel %vm1056_vm13, %v1049_v47, %v1033_v31 }
 0x327   :  { %vm1058_vm14 = vcmp.lt.s32.totalorder %v1051_v48, %v1053_v49  ;;  %vm1060_vm15 = vcmp.lt.s32.totalorder %v1055_v50, %v1057_v51 }
 0x328   :  { %v1059_v52 = vsel %vm1058_vm14, %v1051_v48, %v1053_v49  ;;  %v1061_v53 = vsel %vm1060_vm15, %v1055_v50, %v1057_v51 }
 0x329   :  { %vm1062_vm0 = vcmp.lt.s32.totalorder %v1059_v52, %v1061_v53 }
 0x32a   :  { %v1063_v54 = vsel %vm1062_vm0, %v1059_v52, %v1061_v53 }
 0x32b   :  { %v1064_v55 = vrot.slane %v1063_v54, 4 }
 0x32d   :  { %vm1065_vm1 = vcmp.lt.s32.totalorder %v1063_v54, %v1064_v55 }
 0x32e   :  { %v1066_v56 = vsel %vm1065_vm1, %v1063_v54, %v1064_v55 }
 0x32f   :  { %v1067_v57 = vrot.slane %v1066_v56, 2 }
 0x331   :  { %vm1068_vm2 = vcmp.lt.s32.totalorder %v1066_v56, %v1067_v57 }
 0x332   :  { %v1069_v58 = vsel %vm1068_vm2, %v1066_v56, %v1067_v57 }
 0x333   :  { %v1070_v59 = vrot.slane %v1069_v58, 1 }
 0x335   :  { %vm1071_vm3 = vcmp.lt.s32.totalorder %v1069_v58, %v1070_v59 }
 0x336   :  { %v1072_v60 = vsel %vm1071_vm3, %v1069_v58, %v1070_v59 }
 0x337   :  { %vm1073_vm4 = vcmp.lt.s32.totalorder %v1072_v60, 63 }
 0x338   :  { %v1074_v61 = vsel %vm1073_vm4, %v1072_v60, 63 }
 0x339   :  { %1075 = vst [vmem:[#allocation2] sm:$0x1] %v1074_v61 }
 0x33a   :  { %1507 = shalt.err (!%p1504_p4)
}
 0x33b   :  { %s1508_s25 = scalar_lea.hbm %s2085_s8, 16 }
 0x33c   :  { %p1509_p5 = scmp.ne.s32.totalorder %s2085_s8, %s1508_s25  ;;  %p1512_p6 = scmp.lt.u32.totalorder %s1508_s25, %s2085_s8 }
 0x33e   :  { %p1514_p7 = pnand %p1512_p6, %p1509_p5 }
 0x340   :  { %1517 = shalt.err (!%p1514_p7)
}
 0x341   :  { %1087 = dma.vmem_to_hbm [thread:$0]  %s1085_s23, 16, %s2085_s8, [#allocation3]  }
 0x342   :  { %1518 = dma.done.wait [#allocation3], 16  }
 0x343   :  { %1519 = vsyncadd [#allocation3], 4294967280 }
 0x344   :  { %1093 = vsyncpa [#allocation3], 1 }

</bundles_post_ra>
